<compile_context>
chip_gen: v7x
topology: tpu7x:2x2x1
jax: 0.10.0
libtpu: 0.0.40
codegen_flags: <defaults>
</compile_context>

<pallas_src>
import functools
import math

import jax
import jax.numpy as jnp
from jax.experimental import pallas as pl
from jax.experimental.pallas import tpu as pltpu

NEG_INF = -1000000.0


def _mha_kernel(*refs, num_heads, embedding_size, output_size, bt, n_q, n_k,
                has_mask, return_att, matmul_dtype):
    it = iter(refs)
    q_ref = next(it)
    k_ref = next(it)
    v_ref = next(it)
    mask_ref = next(it) if has_mask else None
    wq_ref = next(it); bq_ref = next(it)
    wk_ref = next(it); bk_ref = next(it)
    wv_ref = next(it); bv_ref = next(it)
    wo_ref = next(it); bo_ref = next(it)
    out_ref = next(it)
    att_ref = next(it) if return_att else None

    f32 = jnp.float32
    scale = 1.0 / math.sqrt(float(embedding_size))

    # Flatten (Bt, n, D) -> (Bt*n, D) once so the projections see a large M dim.
    qf = q_ref[...].reshape(bt * n_q, -1).astype(matmul_dtype)
    kf = k_ref[...].reshape(bt * n_k, -1).astype(matmul_dtype)
    vf = v_ref[...].reshape(bt * n_k, -1).astype(matmul_dtype)

    if has_mask:
        masked = mask_ref[...] != 0.0        # (Bt, 1, n_k), broadcasts over n_q

    out_acc = None                           # (Bt*n_q, output_size), f32
    for h in range(num_heads):               # static unroll over heads
        # Per-head projections: weights already (in, E) -> no transpose.
        Qh = jnp.dot(qf, wq_ref[h].astype(matmul_dtype),
                     preferred_element_type=f32) + bq_ref[h]
        Kh = jnp.dot(kf, wk_ref[h].astype(matmul_dtype),
                     preferred_element_type=f32) + bk_ref[h]
        Vh = jnp.dot(vf, wv_ref[h].astype(matmul_dtype),
                     preferred_element_type=f32) + bv_ref[h]
        Qh = Qh.reshape(bt, n_q, embedding_size)
        Kh = Kh.reshape(bt, n_k, embedding_size)
        Vh = Vh.reshape(bt, n_k, embedding_size)

        # Scores for every batch element of the tile at once (batched matmul).
        qk = jnp.einsum("bqe,bke->bqk",
                        Qh.astype(matmul_dtype), Kh.astype(matmul_dtype),
                        preferred_element_type=f32) * scale
        if has_mask:
            qk = jnp.where(masked, NEG_INF, qk)

        # Numerically stable softmax over keys; elementwise math stays f32.
        qk_max = jnp.max(qk, axis=-1, keepdims=True)
        p = jnp.exp(qk - qk_max)
        denom = jnp.sum(p, axis=-1, keepdims=True)
        att = p * pl.reciprocal(denom, approx=True)

        if return_att:
            att_ref[:, h, :, :] = att.astype(att_ref.dtype)

        va = jnp.einsum("bqk,bke->bqe",
                        att.astype(matmul_dtype), Vh.astype(matmul_dtype),
                        preferred_element_type=f32)
        # Per-head accumulation of the output projection -- no head concat.
        contrib = jnp.dot(
            va.reshape(bt * n_q, embedding_size).astype(matmul_dtype),
            wo_ref[h].astype(matmul_dtype), preferred_element_type=f32)
        out_acc = contrib if out_acc is None else out_acc + contrib

    out = out_acc + bo_ref[...]
    out_ref[...] = out.reshape(bt, n_q, output_size).astype(out_ref.dtype)


def _pick_batch_tile(batch, cap=16):
    for d in range(min(batch, cap), 0, -1):
        if batch % d == 0:
            return d
    return 1


def multi_head_attention(query, key, value, params, *, num_heads,
                         embedding_size, output_size, key_mask=None,
                         return_att=True, matmul_dtype=None):
    """Returns (out, att) if return_att else out.

    out: (B, n_q, output_size); att: (B, H, n_q, n_k) float32.
    """
    B, n_q, Dq = query.shape
    _, n_k, Dk = key.shape
    _, _, Dv = value.shape
    H, E, O = num_heads, embedding_size, output_size
    if matmul_dtype is None:
        matmul_dtype = query.dtype          # use jnp.bfloat16 on v6e/v7x for speed
    has_mask = key_mask is not None

    wq, bq, wk, bk, wv, bv, wo, bo = params
    # Per-head weight slabs, laid out so the kernel never transposes / lane-
    # slices:  x @ wX_h[h] with wX_h[h]: (in, E);  va @ wo_h[h] with (E, out).
    wq_h = wq.reshape(H, E, Dq).transpose(0, 2, 1)       # (H, Dq, E)
    wk_h = wk.reshape(H, E, Dk).transpose(0, 2, 1)       # (H, Dk, E)
    wv_h = wv.reshape(H, E, Dv).transpose(0, 2, 1)       # (H, Dv, E)
    wo_h = wo.reshape(O, H, E).transpose(1, 2, 0)        # (H, E, O)
    bq_h = bq.reshape(H, 1, E)
    bk_h = bk.reshape(H, 1, E)
    bv_h = bv.reshape(H, 1, E)
    bo_2 = bo.reshape(1, O)

    bt = _pick_batch_tile(B)
    grid = (B // bt,)

    def full_spec(arr):
        nd = arr.ndim
        return pl.BlockSpec(arr.shape, lambda b, _nd=nd: (0,) * _nd)

    in_specs = [
        pl.BlockSpec((bt, n_q, Dq), lambda b: (b, 0, 0)),
        pl.BlockSpec((bt, n_k, Dk), lambda b: (b, 0, 0)),
        pl.BlockSpec((bt, n_k, Dv), lambda b: (b, 0, 0)),
    ]
    args = [query, key, value]
    if has_mask:
        mask3 = key_mask.reshape(B, 1, n_k).astype(jnp.float32)
        in_specs.append(pl.BlockSpec((bt, 1, n_k), lambda b: (b, 0, 0)))
        args.append(mask3)
    weight_args = [wq_h, bq_h, wk_h, bk_h, wv_h, bv_h, wo_h, bo_2]
    in_specs += [full_spec(a) for a in weight_args]
    args += weight_args

    out_shape = [jax.ShapeDtypeStruct((B, n_q, O), query.dtype)]
    out_specs = [pl.BlockSpec((bt, n_q, O), lambda b: (b, 0, 0))]
    if return_att:
        out_shape.append(jax.ShapeDtypeStruct((B, H, n_q, n_k), jnp.float32))
        out_specs.append(pl.BlockSpec((bt, H, n_q, n_k), lambda b: (b, 0, 0, 0)))

    kernel = functools.partial(
        _mha_kernel, num_heads=H, embedding_size=E, output_size=O,
        bt=bt, n_q=n_q, n_k=n_k, has_mask=has_mask, return_att=return_att,
        matmul_dtype=matmul_dtype)

    grid_spec = pltpu.PrefetchScalarGridSpec(
        num_scalar_prefetch=0, grid=grid,
        in_specs=in_specs, out_specs=out_specs)

    results = pl.pallas_call(
        kernel,
        out_shape=tuple(out_shape),
        grid_spec=grid_spec,
        compiler_params=pltpu.CompilerParams(
            dimension_semantics=("parallel",)),
    )(*args)

    if return_att:
        out, att = results
        return out, att
    return results[0]


def init_params(key, query_size, key_size, value_size, output_size,
                num_heads, embedding_size):
    """Deterministic torch.nn.Linear-style init (uniform +/- 1/sqrt(fan_in))."""
    he = num_heads * embedding_size
    shapes = [
        ((he, query_size), (he,)),            # fc_q
        ((he, key_size), (he,)),              # fc_k
        ((he, value_size), (he,)),            # fc_v
        ((output_size, he), (output_size,)),  # fc_out
    ]
    params = []
    for (w_shape, b_shape) in shapes:
        key, kw, kb = jax.random.split(key, 3)
        bound = 1.0 / math.sqrt(w_shape[1])
        params.append(jax.random.uniform(kw, w_shape, jnp.float32, -bound, bound))
        params.append(jax.random.uniform(kb, b_shape, jnp.float32, -bound, bound))
    return tuple(params)


def reference(query, key, value, params, *, num_heads, embedding_size, key_mask=None):
    """Pure-JAX reference mirroring the PyTorch forward."""
    wq, bq, wk, bk, wv, bv, wo, bo = params
    B, n_q, _ = query.shape
    _, n_k, _ = key.shape
    H, E = num_heads, embedding_size
    Q = (query @ wq.T + bq).reshape(B, n_q, H, E).transpose(0, 2, 1, 3)
    K = (key @ wk.T + bk).reshape(B, n_k, H, E).transpose(0, 2, 1, 3)
    V = (value @ wv.T + bv).reshape(B, n_k, H, E).transpose(0, 2, 1, 3)
    qk = jnp.einsum("bhqe,bhke->bhqk", Q, K)
    if key_mask is None:
        qk = qk / math.sqrt(E)
    else:
        m = key_mask.reshape(B, 1, 1, n_k)
        qk = (1 - m) * qk / math.sqrt(E) + m * NEG_INF
    att = jax.nn.softmax(qk, axis=3)
    va = jnp.einsum("bhqk,bhke->bhqe", att, V)
    va = va.transpose(0, 2, 1, 3).reshape(B, n_q, H * E)
    out = va @ wo.T + bo
    return out, att


if __name__ == "__main__":
    # Small shapes consistent with the module's forward.
    B, n_q, n_k = 2, 8, 8
    query_size, key_size, value_size = 16, 16, 16
    output_size, num_heads, embedding_size = 32, 2, 16

    root = jax.random.PRNGKey(0)
    kq, kk, kv, kp, km = jax.random.split(root, 5)
    query = jax.random.normal(kq, (B, n_q, query_size), jnp.float32)
    key = jax.random.normal(kk, (B, n_k, key_size), jnp.float32)
    value = jax.random.normal(kv, (B, n_k, value_size), jnp.float32)
    params = init_params(kp, query_size, key_size, value_size,
                         output_size, num_heads, embedding_size)

    # --- unmasked path (mask input / DMA / select skipped statically) ---
    out, att = multi_head_attention(
        query, key, value, params,
        num_heads=num_heads, embedding_size=embedding_size,
        output_size=output_size, key_mask=None, return_att=True)
    jax.block_until_ready((out, att))
    ref_out, ref_att = reference(query, key, value, params,
                                 num_heads=num_heads,
                                 embedding_size=embedding_size, key_mask=None)
    assert out.shape == (B, n_q, output_size)
    assert att.shape == (B, num_heads, n_q, n_k)
    assert jnp.allclose(out, ref_out, atol=5e-3, rtol=5e-3)
    assert jnp.allclose(att, ref_att, atol=2e-3, rtol=2e-3)

    # --- masked path (binary key-padding mask) ---
    key_mask = (jax.random.uniform(km, (B, n_k)) < 0.3).astype(jnp.float32)
    out_m, att_m = multi_head_attention(
        query, key, value, params,
        num_heads=num_heads, embedding_size=embedding_size,
        output_size=output_size, key_mask=key_mask, return_att=True)
    jax.block_until_ready((out_m, att_m))
    ref_out_m, ref_att_m = reference(query, key, value, params,
                                     num_heads=num_heads,
                                     embedding_size=embedding_size,
                                     key_mask=key_mask)
    assert jnp.allclose(out_m, ref_out_m, atol=5e-3, rtol=5e-3)
    assert jnp.allclose(att_m, ref_att_m, atol=2e-3, rtol=2e-3)

    # --- output-only path (skips the (B,H,n_q,n_k) HBM write entirely) ---
    out_only = multi_head_attention(
        query, key, value, params,
        num_heads=num_heads, embedding_size=embedding_size,
        output_size=output_size, key_mask=None, return_att=False)
    jax.block_until_ready(out_only)
    assert jnp.allclose(out_only, ref_out, atol=5e-3, rtol=5e-3)

    print("KERNEL_OK")
</pallas_src>

<mosaic_0001>
module attributes {stable_mosaic.version = 11 : i64} {
  func.func @_mha_kernel(%arg0: i32, %arg1: memref<2x8x16xf32, #tpu.memory_space<vmem>>, %arg2: memref<2x8x16xf32, #tpu.memory_space<vmem>>, %arg3: memref<2x8x16xf32, #tpu.memory_space<vmem>>, %arg4: memref<2x16x16xf32, #tpu.memory_space<vmem>>, %arg5: memref<2x1x16xf32, #tpu.memory_space<vmem>>, %arg6: memref<2x16x16xf32, #tpu.memory_space<vmem>>, %arg7: memref<2x1x16xf32, #tpu.memory_space<vmem>>, %arg8: memref<2x16x16xf32, #tpu.memory_space<vmem>>, %arg9: memref<2x1x16xf32, #tpu.memory_space<vmem>>, %arg10: memref<2x16x32xf32, #tpu.memory_space<vmem>>, %arg11: memref<1x32xf32, #tpu.memory_space<vmem>>, %arg12: memref<2x8x32xf32, #tpu.memory_space<vmem>>, %arg13: memref<2x2x8x8xf32, #tpu.memory_space<vmem>>) attributes {dimension_semantics = [#tpu.dimension_semantics<parallel>], iteration_bounds = array<i64: 1>, scalar_prefetch = 0 : i64, scratch_operands = 0 : i64, tpu.core_type = #tpu.core_type<tc>, window_params = [{transform_indices = @transform_0, window_bounds = array<i64: 2, 8, 16>}, {transform_indices = @transform_1, window_bounds = array<i64: 2, 8, 16>}, {transform_indices = @transform_2, window_bounds = array<i64: 2, 8, 16>}, {pipeline_mode = #tpu.pipeline_mode<synchronous>, transform_indices = @transform_3, window_bounds = array<i64: 2, 16, 16>}, {pipeline_mode = #tpu.pipeline_mode<synchronous>, transform_indices = @transform_4, window_bounds = array<i64: 2, 1, 16>}, {pipeline_mode = #tpu.pipeline_mode<synchronous>, transform_indices = @transform_5, window_bounds = array<i64: 2, 16, 16>}, {pipeline_mode = #tpu.pipeline_mode<synchronous>, transform_indices = @transform_6, window_bounds = array<i64: 2, 1, 16>}, {pipeline_mode = #tpu.pipeline_mode<synchronous>, transform_indices = @transform_7, window_bounds = array<i64: 2, 16, 16>}, {pipeline_mode = #tpu.pipeline_mode<synchronous>, transform_indices = @transform_8, window_bounds = array<i64: 2, 1, 16>}, {pipeline_mode = #tpu.pipeline_mode<synchronous>, transform_indices = @transform_9, window_bounds = array<i64: 2, 16, 32>}, {pipeline_mode = #tpu.pipeline_mode<synchronous>, transform_indices = @transform_10, window_bounds = array<i64: 1, 32>}, {transform_indices = @transform_11, window_bounds = array<i64: 2, 8, 32>}, {transform_indices = @transform_12, window_bounds = array<i64: 2, 2, 8, 8>}]} {
    %c0 = arith.constant 0 : index
    %c0_0 = arith.constant 0 : index
    %c0_1 = arith.constant 0 : index
    %0 = vector.load %arg1[%c0, %c0_0, %c0_1] : memref<2x8x16xf32, #tpu.memory_space<vmem>>, vector<2x8x16xf32>
    %1 = vector.shape_cast %0 : vector<2x8x16xf32> to vector<16x16xf32>
    %c0_2 = arith.constant 0 : index
    %c0_3 = arith.constant 0 : index
    %c0_4 = arith.constant 0 : index
    %2 = vector.load %arg2[%c0_2, %c0_3, %c0_4] : memref<2x8x16xf32, #tpu.memory_space<vmem>>, vector<2x8x16xf32>
    %3 = vector.shape_cast %2 : vector<2x8x16xf32> to vector<16x16xf32>
    %c0_5 = arith.constant 0 : index
    %c0_6 = arith.constant 0 : index
    %c0_7 = arith.constant 0 : index
    %4 = vector.load %arg3[%c0_5, %c0_6, %c0_7] : memref<2x8x16xf32, #tpu.memory_space<vmem>>, vector<2x8x16xf32>
    %5 = vector.shape_cast %4 : vector<2x8x16xf32> to vector<16x16xf32>
    %c0_8 = arith.constant 0 : index
    %c0_9 = arith.constant 0 : index
    %c0_10 = arith.constant 0 : index
    %6 = vector.load %arg4[%c0_8, %c0_9, %c0_10] : memref<2x16x16xf32, #tpu.memory_space<vmem>>, vector<1x16x16xf32>
    %7 = vector.shape_cast %6 : vector<1x16x16xf32> to vector<16x16xf32>
    %cst = arith.constant dense<0.000000e+00> : vector<16x16xf32>
    %8 = tpu.matmul %1, %7, %cst {dimension_numbers = #tpu.dot_dimension_numbers<[1], [0], [0], [1], [0, 0, 1, 1], [], []>} : vector<16x16xf32>, vector<16x16xf32>, vector<16x16xf32> -> vector<16x16xf32>
    %c0_11 = arith.constant 0 : index
    %c0_12 = arith.constant 0 : index
    %c0_13 = arith.constant 0 : index
    %9 = vector.load %arg5[%c0_11, %c0_12, %c0_13] : memref<2x1x16xf32, #tpu.memory_space<vmem>>, vector<1x1x16xf32>
    %10 = vector.shape_cast %9 : vector<1x1x16xf32> to vector<1x16xf32>
    %11 = vector.broadcast %10 : vector<1x16xf32> to vector<16x16xf32>
    %12 = arith.addf %8, %11 : vector<16x16xf32>
    %c0_14 = arith.constant 0 : index
    %c0_15 = arith.constant 0 : index
    %c0_16 = arith.constant 0 : index
    %13 = vector.load %arg6[%c0_14, %c0_15, %c0_16] : memref<2x16x16xf32, #tpu.memory_space<vmem>>, vector<1x16x16xf32>
    %14 = vector.shape_cast %13 : vector<1x16x16xf32> to vector<16x16xf32>
    %cst_17 = arith.constant dense<0.000000e+00> : vector<16x16xf32>
    %15 = tpu.matmul %3, %14, %cst_17 {dimension_numbers = #tpu.dot_dimension_numbers<[1], [0], [0], [1], [0, 0, 1, 1], [], []>} : vector<16x16xf32>, vector<16x16xf32>, vector<16x16xf32> -> vector<16x16xf32>
    %c0_18 = arith.constant 0 : index
    %c0_19 = arith.constant 0 : index
    %c0_20 = arith.constant 0 : index
    %16 = vector.load %arg7[%c0_18, %c0_19, %c0_20] : memref<2x1x16xf32, #tpu.memory_space<vmem>>, vector<1x1x16xf32>
    %17 = vector.shape_cast %16 : vector<1x1x16xf32> to vector<1x16xf32>
    %18 = vector.broadcast %17 : vector<1x16xf32> to vector<16x16xf32>
    %19 = arith.addf %15, %18 : vector<16x16xf32>
    %c0_21 = arith.constant 0 : index
    %c0_22 = arith.constant 0 : index
    %c0_23 = arith.constant 0 : index
    %20 = vector.load %arg8[%c0_21, %c0_22, %c0_23] : memref<2x16x16xf32, #tpu.memory_space<vmem>>, vector<1x16x16xf32>
    %21 = vector.shape_cast %20 : vector<1x16x16xf32> to vector<16x16xf32>
    %cst_24 = arith.constant dense<0.000000e+00> : vector<16x16xf32>
    %22 = tpu.matmul %5, %21, %cst_24 {dimension_numbers = #tpu.dot_dimension_numbers<[1], [0], [0], [1], [0, 0, 1, 1], [], []>} : vector<16x16xf32>, vector<16x16xf32>, vector<16x16xf32> -> vector<16x16xf32>
    %c0_25 = arith.constant 0 : index
    %c0_26 = arith.constant 0 : index
    %c0_27 = arith.constant 0 : index
    %23 = vector.load %arg9[%c0_25, %c0_26, %c0_27] : memref<2x1x16xf32, #tpu.memory_space<vmem>>, vector<1x1x16xf32>
    %24 = vector.shape_cast %23 : vector<1x1x16xf32> to vector<1x16xf32>
    %25 = vector.broadcast %24 : vector<1x16xf32> to vector<16x16xf32>
    %26 = arith.addf %22, %25 : vector<16x16xf32>
    %27 = vector.shape_cast %12 : vector<16x16xf32> to vector<2x8x16xf32>
    %28 = vector.shape_cast %19 : vector<16x16xf32> to vector<2x8x16xf32>
    %29 = vector.shape_cast %26 : vector<16x16xf32> to vector<2x8x16xf32>
    "tpu.trace_start"() <{level = 10 : i32, message = "bqe,bke->bqk"}> : () -> ()
    %cst_28 = arith.constant dense<0.000000e+00> : vector<2x8x8xf32>
    %30 = tpu.matmul %27, %28, %cst_28 {dimension_numbers = #tpu.dot_dimension_numbers<[2], [2], [1], [1], [0, 0, 0, 1, 1, 1], [0], [0]>} : vector<2x8x16xf32>, vector<2x8x16xf32>, vector<2x8x8xf32> -> vector<2x8x8xf32>
    "tpu.trace_stop"() : () -> ()
    %cst_29 = arith.constant 2.500000e-01 : f32
    %31 = vector.broadcast %cst_29 : f32 to vector<2x8x8xf32>
    %32 = arith.mulf %30, %31 : vector<2x8x8xf32>
    %cst_30 = arith.constant dense<0xFF800000> : vector<2x8xf32>
    %33 = vector.multi_reduction <maximumf>, %32, %cst_30 [2] : vector<2x8x8xf32> to vector<2x8xf32>
    %34 = vector.shape_cast %33 : vector<2x8xf32> to vector<2x8x1xf32>
    %35 = vector.broadcast %34 : vector<2x8x1xf32> to vector<2x8x8xf32>
    %36 = arith.subf %32, %35 : vector<2x8x8xf32>
    %37 = math.exp %36 : vector<2x8x8xf32>
    %cst_31 = arith.constant dense<0.000000e+00> : vector<2x8xf32>
    %38 = vector.multi_reduction <add>, %37, %cst_31 [2] : vector<2x8x8xf32> to vector<2x8xf32>
    %39 = vector.shape_cast %38 : vector<2x8xf32> to vector<2x8x1xf32>
    %40 = tpu.reciprocal %39 {approx = true} : vector<2x8x1xf32> -> vector<2x8x1xf32>
    %41 = vector.broadcast %40 : vector<2x8x1xf32> to vector<2x8x8xf32>
    %42 = arith.mulf %37, %41 : vector<2x8x8xf32>
    %c0_32 = arith.constant 0 : index
    %c0_33 = arith.constant 0 : index
    %c0_34 = arith.constant 0 : index
    %c0_35 = arith.constant 0 : index
    %43 = vector.load %arg13[%c0_32, %c0_33, %c0_34, %c0_35] : memref<2x2x8x8xf32, #tpu.memory_space<vmem>>, vector<2x1x8x8xf32>
    %44 = vector.shape_cast %43 : vector<2x1x8x8xf32> to vector<2x8x8xf32>
    %45 = vector.shape_cast %42 : vector<2x8x8xf32> to vector<2x1x8x8xf32>
    tpu.vector_store %arg13[%c0_32, %c0_33, %c0_34, %c0_35], %45 {strides = array<i32>} : memref<2x2x8x8xf32, #tpu.memory_space<vmem>>, vector<2x1x8x8xf32>,
    "tpu.trace_start"() <{level = 10 : i32, message = "bqk,bke->bqe"}> : () -> ()
    %cst_36 = arith.constant dense<0.000000e+00> : vector<2x8x16xf32>
    %46 = tpu.matmul %42, %29, %cst_36 {dimension_numbers = #tpu.dot_dimension_numbers<[2], [1], [1], [2], [0, 0, 0, 1, 1, 2], [0], [0]>} : vector<2x8x8xf32>, vector<2x8x16xf32>, vector<2x8x16xf32> -> vector<2x8x16xf32>
    "tpu.trace_stop"() : () -> ()
    %47 = vector.shape_cast %46 : vector<2x8x16xf32> to vector<16x16xf32>
    %c0_37 = arith.constant 0 : index
    %c0_38 = arith.constant 0 : index
    %c0_39 = arith.constant 0 : index
    %48 = vector.load %arg10[%c0_37, %c0_38, %c0_39] : memref<2x16x32xf32, #tpu.memory_space<vmem>>, vector<1x16x32xf32>
    %49 = vector.shape_cast %48 : vector<1x16x32xf32> to vector<16x32xf32>
    %cst_40 = arith.constant dense<0.000000e+00> : vector<16x32xf32>
    %50 = tpu.matmul %47, %49, %cst_40 {dimension_numbers = #tpu.dot_dimension_numbers<[1], [0], [0], [1], [0, 0, 1, 1], [], []>} : vector<16x16xf32>, vector<16x32xf32>, vector<16x32xf32> -> vector<16x32xf32>
    %c1 = arith.constant 1 : index
    %c0_41 = arith.constant 0 : index
    %c0_42 = arith.constant 0 : index
    %51 = vector.load %arg4[%c1, %c0_41, %c0_42] : memref<2x16x16xf32, #tpu.memory_space<vmem>>, vector<1x16x16xf32>
    %52 = vector.shape_cast %51 : vector<1x16x16xf32> to vector<16x16xf32>
    %cst_43 = arith.constant dense<0.000000e+00> : vector<16x16xf32>
    %53 = tpu.matmul %1, %52, %cst_43 {dimension_numbers = #tpu.dot_dimension_numbers<[1], [0], [0], [1], [0, 0, 1, 1], [], []>} : vector<16x16xf32>, vector<16x16xf32>, vector<16x16xf32> -> vector<16x16xf32>
    %c1_44 = arith.constant 1 : index
    %c0_45 = arith.constant 0 : index
    %c0_46 = arith.constant 0 : index
    %54 = vector.load %arg5[%c1_44, %c0_45, %c0_46] : memref<2x1x16xf32, #tpu.memory_space<vmem>>, vector<1x1x16xf32>
    %55 = vector.shape_cast %54 : vector<1x1x16xf32> to vector<1x16xf32>
    %56 = vector.broadcast %55 : vector<1x16xf32> to vector<16x16xf32>
    %57 = arith.addf %53, %56 : vector<16x16xf32>
    %c1_47 = arith.constant 1 : index
    %c0_48 = arith.constant 0 : index
    %c0_49 = arith.constant 0 : index
    %58 = vector.load %arg6[%c1_47, %c0_48, %c0_49] : memref<2x16x16xf32, #tpu.memory_space<vmem>>, vector<1x16x16xf32>
    %59 = vector.shape_cast %58 : vector<1x16x16xf32> to vector<16x16xf32>
    %cst_50 = arith.constant dense<0.000000e+00> : vector<16x16xf32>
    %60 = tpu.matmul %3, %59, %cst_50 {dimension_numbers = #tpu.dot_dimension_numbers<[1], [0], [0], [1], [0, 0, 1, 1], [], []>} : vector<16x16xf32>, vector<16x16xf32>, vector<16x16xf32> -> vector<16x16xf32>
    %c1_51 = arith.constant 1 : index
    %c0_52 = arith.constant 0 : index
    %c0_53 = arith.constant 0 : index
    %61 = vector.load %arg7[%c1_51, %c0_52, %c0_53] : memref<2x1x16xf32, #tpu.memory_space<vmem>>, vector<1x1x16xf32>
    %62 = vector.shape_cast %61 : vector<1x1x16xf32> to vector<1x16xf32>
    %63 = vector.broadcast %62 : vector<1x16xf32> to vector<16x16xf32>
    %64 = arith.addf %60, %63 : vector<16x16xf32>
    %c1_54 = arith.constant 1 : index
    %c0_55 = arith.constant 0 : index
    %c0_56 = arith.constant 0 : index
    %65 = vector.load %arg8[%c1_54, %c0_55, %c0_56] : memref<2x16x16xf32, #tpu.memory_space<vmem>>, vector<1x16x16xf32>
    %66 = vector.shape_cast %65 : vector<1x16x16xf32> to vector<16x16xf32>
    %cst_57 = arith.constant dense<0.000000e+00> : vector<16x16xf32>
    %67 = tpu.matmul %5, %66, %cst_57 {dimension_numbers = #tpu.dot_dimension_numbers<[1], [0], [0], [1], [0, 0, 1, 1], [], []>} : vector<16x16xf32>, vector<16x16xf32>, vector<16x16xf32> -> vector<16x16xf32>
    %c1_58 = arith.constant 1 : index
    %c0_59 = arith.constant 0 : index
    %c0_60 = arith.constant 0 : index
    %68 = vector.load %arg9[%c1_58, %c0_59, %c0_60] : memref<2x1x16xf32, #tpu.memory_space<vmem>>, vector<1x1x16xf32>
    %69 = vector.shape_cast %68 : vector<1x1x16xf32> to vector<1x16xf32>
    %70 = vector.broadcast %69 : vector<1x16xf32> to vector<16x16xf32>
    %71 = arith.addf %67, %70 : vector<16x16xf32>
    %72 = vector.shape_cast %57 : vector<16x16xf32> to vector<2x8x16xf32>
    %73 = vector.shape_cast %64 : vector<16x16xf32> to vector<2x8x16xf32>
    %74 = vector.shape_cast %71 : vector<16x16xf32> to vector<2x8x16xf32>
    "tpu.trace_start"() <{level = 10 : i32, message = "bqe,bke->bqk"}> : () -> ()
    %cst_61 = arith.constant dense<0.000000e+00> : vector<2x8x8xf32>
    %75 = tpu.matmul %72, %73, %cst_61 {dimension_numbers = #tpu.dot_dimension_numbers<[2], [2], [1], [1], [0, 0, 0, 1, 1, 1], [0], [0]>} : vector<2x8x16xf32>, vector<2x8x16xf32>, vector<2x8x8xf32> -> vector<2x8x8xf32>
    "tpu.trace_stop"() : () -> ()
    %cst_62 = arith.constant 2.500000e-01 : f32
    %76 = vector.broadcast %cst_62 : f32 to vector<2x8x8xf32>
    %77 = arith.mulf %75, %76 : vector<2x8x8xf32>
    %cst_63 = arith.constant dense<0xFF800000> : vector<2x8xf32>
    %78 = vector.multi_reduction <maximumf>, %77, %cst_63 [2] : vector<2x8x8xf32> to vector<2x8xf32>
    %79 = vector.shape_cast %78 : vector<2x8xf32> to vector<2x8x1xf32>
    %80 = vector.broadcast %79 : vector<2x8x1xf32> to vector<2x8x8xf32>
    %81 = arith.subf %77, %80 : vector<2x8x8xf32>
    %82 = math.exp %81 : vector<2x8x8xf32>
    %cst_64 = arith.constant dense<0.000000e+00> : vector<2x8xf32>
    %83 = vector.multi_reduction <add>, %82, %cst_64 [2] : vector<2x8x8xf32> to vector<2x8xf32>
    %84 = vector.shape_cast %83 : vector<2x8xf32> to vector<2x8x1xf32>
    %85 = tpu.reciprocal %84 {approx = true} : vector<2x8x1xf32> -> vector<2x8x1xf32>
    %86 = vector.broadcast %85 : vector<2x8x1xf32> to vector<2x8x8xf32>
    %87 = arith.mulf %82, %86 : vector<2x8x8xf32>
    %c0_65 = arith.constant 0 : index
    %c1_66 = arith.constant 1 : index
    %c0_67 = arith.constant 0 : index
    %c0_68 = arith.constant 0 : index
    %88 = vector.load %arg13[%c0_65, %c1_66, %c0_67, %c0_68] : memref<2x2x8x8xf32, #tpu.memory_space<vmem>>, vector<2x1x8x8xf32>
    %89 = vector.shape_cast %88 : vector<2x1x8x8xf32> to vector<2x8x8xf32>
    %90 = vector.shape_cast %87 : vector<2x8x8xf32> to vector<2x1x8x8xf32>
    tpu.vector_store %arg13[%c0_65, %c1_66, %c0_67, %c0_68], %90 {strides = array<i32>} : memref<2x2x8x8xf32, #tpu.memory_space<vmem>>, vector<2x1x8x8xf32>,
    "tpu.trace_start"() <{level = 10 : i32, message = "bqk,bke->bqe"}> : () -> ()
    %cst_69 = arith.constant dense<0.000000e+00> : vector<2x8x16xf32>
    %91 = tpu.matmul %87, %74, %cst_69 {dimension_numbers = #tpu.dot_dimension_numbers<[2], [1], [1], [2], [0, 0, 0, 1, 1, 2], [0], [0]>} : vector<2x8x8xf32>, vector<2x8x16xf32>, vector<2x8x16xf32> -> vector<2x8x16xf32>
    "tpu.trace_stop"() : () -> ()
    %92 = vector.shape_cast %91 : vector<2x8x16xf32> to vector<16x16xf32>
    %c1_70 = arith.constant 1 : index
    %c0_71 = arith.constant 0 : index
    %c0_72 = arith.constant 0 : index
    %93 = vector.load %arg10[%c1_70, %c0_71, %c0_72] : memref<2x16x32xf32, #tpu.memory_space<vmem>>, vector<1x16x32xf32>
    %94 = vector.shape_cast %93 : vector<1x16x32xf32> to vector<16x32xf32>
    %cst_73 = arith.constant dense<0.000000e+00> : vector<16x32xf32>
    %95 = tpu.matmul %92, %94, %cst_73 {dimension_numbers = #tpu.dot_dimension_numbers<[1], [0], [0], [1], [0, 0, 1, 1], [], []>} : vector<16x16xf32>, vector<16x32xf32>, vector<16x32xf32> -> vector<16x32xf32>
    %96 = arith.addf %50, %95 : vector<16x32xf32>
    %c0_74 = arith.constant 0 : index
    %c0_75 = arith.constant 0 : index
    %97 = vector.load %arg11[%c0_74, %c0_75] : memref<1x32xf32, #tpu.memory_space<vmem>>, vector<1x32xf32>
    %98 = vector.broadcast %97 : vector<1x32xf32> to vector<16x32xf32>
    %99 = arith.addf %96, %98 : vector<16x32xf32>
    %100 = vector.shape_cast %99 : vector<16x32xf32> to vector<2x8x32xf32>
    %c0_76 = arith.constant 0 : index
    %c0_77 = arith.constant 0 : index
    %c0_78 = arith.constant 0 : index
    %101 = vector.load %arg12[%c0_76, %c0_77, %c0_78] : memref<2x8x32xf32, #tpu.memory_space<vmem>>, vector<2x8x32xf32>
    tpu.vector_store %arg12[%c0_76, %c0_77, %c0_78], %100 {strides = array<i32>} : memref<2x8x32xf32, #tpu.memory_space<vmem>>, vector<2x8x32xf32>,
    return
  }
  func.func @transform_0(%arg0: i32) -> (i32, i32, i32) {
    %c0_i32 = arith.constant 0 : i32
    %c0_i32_0 = arith.constant 0 : i32
    %c0_i32_1 = arith.constant 0 : i32
    return %arg0, %c0_i32, %c0_i32_0 : i32, i32, i32
  }
  func.func @transform_1(%arg0: i32) -> (i32, i32, i32) {
    %c0_i32 = arith.constant 0 : i32
    %c0_i32_0 = arith.constant 0 : i32
    %c0_i32_1 = arith.constant 0 : i32
    return %arg0, %c0_i32, %c0_i32_0 : i32, i32, i32
  }
  func.func @transform_2(%arg0: i32) -> (i32, i32, i32) {
    %c0_i32 = arith.constant 0 : i32
    %c0_i32_0 = arith.constant 0 : i32
    %c0_i32_1 = arith.constant 0 : i32
    return %arg0, %c0_i32, %c0_i32_0 : i32, i32, i32
  }
  func.func @transform_3(%arg0: i32) -> (i32, i32, i32) {
    %c0_i32 = arith.constant 0 : i32
    %c0_i32_0 = arith.constant 0 : i32
    %c0_i32_1 = arith.constant 0 : i32
    %c0_i32_2 = arith.constant 0 : i32
    return %c0_i32, %c0_i32_0, %c0_i32_1 : i32, i32, i32
  }
  func.func @transform_4(%arg0: i32) -> (i32, i32, i32) {
    %c0_i32 = arith.constant 0 : i32
    %c0_i32_0 = arith.constant 0 : i32
    %c0_i32_1 = arith.constant 0 : i32
    %c0_i32_2 = arith.constant 0 : i32
    return %c0_i32, %c0_i32_0, %c0_i32_1 : i32, i32, i32
  }
  func.func @transform_5(%arg0: i32) -> (i32, i32, i32) {
    %c0_i32 = arith.constant 0 : i32
    %c0_i32_0 = arith.constant 0 : i32
    %c0_i32_1 = arith.constant 0 : i32
    %c0_i32_2 = arith.constant 0 : i32
    return %c0_i32, %c0_i32_0, %c0_i32_1 : i32, i32, i32
  }
  func.func @transform_6(%arg0: i32) -> (i32, i32, i32) {
    %c0_i32 = arith.constant 0 : i32
    %c0_i32_0 = arith.constant 0 : i32
    %c0_i32_1 = arith.constant 0 : i32
    %c0_i32_2 = arith.constant 0 : i32
    return %c0_i32, %c0_i32_0, %c0_i32_1 : i32, i32, i32
  }
  func.func @transform_7(%arg0: i32) -> (i32, i32, i32) {
    %c0_i32 = arith.constant 0 : i32
    %c0_i32_0 = arith.constant 0 : i32
    %c0_i32_1 = arith.constant 0 : i32
    %c0_i32_2 = arith.constant 0 : i32
    return %c0_i32, %c0_i32_0, %c0_i32_1 : i32, i32, i32
  }
  func.func @transform_8(%arg0: i32) -> (i32, i32, i32) {
    %c0_i32 = arith.constant 0 : i32
    %c0_i32_0 = arith.constant 0 : i32
    %c0_i32_1 = arith.constant 0 : i32
    %c0_i32_2 = arith.constant 0 : i32
    return %c0_i32, %c0_i32_0, %c0_i32_1 : i32, i32, i32
  }
  func.func @transform_9(%arg0: i32) -> (i32, i32, i32) {
    %c0_i32 = arith.constant 0 : i32
    %c0_i32_0 = arith.constant 0 : i32
    %c0_i32_1 = arith.constant 0 : i32
    %c0_i32_2 = arith.constant 0 : i32
    return %c0_i32, %c0_i32_0, %c0_i32_1 : i32, i32, i32
  }
  func.func @transform_10(%arg0: i32) -> (i32, i32) {
    %c0_i32 = arith.constant 0 : i32
    %c0_i32_0 = arith.constant 0 : i32
    %c0_i32_1 = arith.constant 0 : i32
    return %c0_i32, %c0_i32_0 : i32, i32
  }
  func.func @transform_11(%arg0: i32) -> (i32, i32, i32) {
    %c0_i32 = arith.constant 0 : i32
    %c0_i32_0 = arith.constant 0 : i32
    %c0_i32_1 = arith.constant 0 : i32
    return %arg0, %c0_i32, %c0_i32_0 : i32, i32, i32
  }
  func.func @transform_12(%arg0: i32) -> (i32, i32, i32, i32) {
    %c0_i32 = arith.constant 0 : i32
    %c0_i32_0 = arith.constant 0 : i32
    %c0_i32_1 = arith.constant 0 : i32
    %c0_i32_2 = arith.constant 0 : i32
    return %arg0, %c0_i32, %c0_i32_0, %c0_i32_1 : i32, i32, i32, i32
  }
}

</mosaic_0001>

<bundles_post_ra>
// kernel: tpu_custom_call.1
= control target key start
LH: loop header
LB: loop body
LE: loop exit
PB: predicated region body
PF: predicated region fallthrough
CT: control target
= control target key end

     0   :  { %18 = vsyncpa [#allocation3], 0  ;;  %s2387_s0 = inlined_call_operand.hbm [shape: f32[2,8,16], index: 0, kind: input, shape index: {}]   ;;  %s2388_s1 = inlined_call_operand.hbm [shape: f32[2,8,16], index: 1, kind: input, shape index: {}]   ;;  %s2389_s2 = inlined_call_operand.hbm [shape: f32[2,8,16], index: 2, kind: input, shape index: {}]   ;;  %s2390_s3 = inlined_call_operand.hbm [shape: f32[2,16,16], index: 3, kind: input, shape index: {}]   ;;  %s2391_s4 = inlined_call_operand.vmem [shape: f32[2,1,16], index: 4, kind: input, shape index: {}]   ;;  %s2392_s5 = inlined_call_operand.hbm [shape: f32[2,16,16], index: 5, kind: input, shape index: {}]   ;;  %s2393_s6 = inlined_call_operand.hbm [shape: f32[2,1,16], index: 6, kind: input, shape index: {}]   ;;  %s2394_s7 = inlined_call_operand.hbm [shape: f32[2,16,16], index: 7, kind: input, shape index: {}]   ;;  %s2395_s8 = inlined_call_operand.hbm [shape: f32[2,1,16], index: 8, kind: input, shape index: {}]   ;;  %s2396_s9 = inlined_call_operand.vmem [shape: f32[2,16,32], index: 9, kind: input, shape index: {}]   ;;  %s2397_s10 = inlined_call_operand.vmem [shape: f32[1,32], index: 10, kind: input, shape index: {}]   ;;  %s2398_s11 = inlined_call_operand.hbm [shape: f32[2,8,32], index: 11, kind: output, shape index: {0}]   ;;  %s2399_s12 = inlined_call_operand.hbm [shape: f32[2,2,8,8], index: 12, kind: output, shape index: {1}]  }
   0x1   :  { %19 = vsyncpa [#allocation6], 0 }
   0x2   :  { %20 = vsyncpa [#allocation9], 0 }
   0x3   :  { %21 = vsyncpa [#allocation12], 0 }
   0x4   :  { %22 = vsyncpa [#allocation15], 0 }
   0x5   :  { %23 = vsyncpa [#allocation4], 0 }
   0x6   :  { %24 = vsyncpa [#allocation18], 0  ;;  %s2034_s21 = smov [#allocation5]   ;;  %s2035_s23 = smov [#allocation8]  }
   0x7   :  { %s42_s22 = sshll.u32 %s2034_s21, 4  ;;  %s66_s24 = sshll.u32 %s2035_s23, 4  ;;  %s43_s22 = int_to_ptr.vmem [resolvable:$true] %s42_s22  ;;  %s2115_s24 = int_to_ptr.vmem [resolvable:$true] %s66_s24 }
   0x8   :  { %s1800_s27 = scalar_lea.hbm %s2388_s1, 256 }
   0x9   :  { %p1801_p0 = scmp.ne.s32.totalorder %s2388_s1, %s1800_s27  ;;  %p1804_p1 = scmp.lt.u32.totalorder %s1800_s27, %s2388_s1 }
   0xb   :  { %p1806_p2 = pnand %p1804_p1, %p1801_p0 }
   0xd   :  { %1809 = shalt.err (!%p1806_p2)
}
   0xe   :  { %s1810_s14 = scalar_lea.vmem %s43_s22, 256  ;;  %p1815_p4 = scmp.lt.s32.totalorder %s43_s22, %s43_s22 }
   0xf   :  { %p1811_p3 = scmp.ne.s32.totalorder %s43_s22, %s1810_s14  ;;  %p1816_p5 = scmp.lt.s32.totalorder %s1810_s14, %s1810_s14 }
  0x11   :  { %p1817_p6 = por %p1816_p5, %p1815_p4 }
  0x13   :  { %p1818_p7 = pnand %p1817_p6, %p1811_p3 }
  0x15   :  { %1821 = shalt.err (!%p1818_p7)
}
  0x16   :  { %s2036_s15 = smov 128   ;;  %s2037_s16 = smov 8  }
  0x17   :  { %48 = dma.hbm_to_vmem [thread:$0]  %s2388_s1, 256, %s43_s22, [#allocation6], %s2036_s15, %s2036_s15, %s2037_s16  }
  0x18   :  { %s1822_s21 = scalar_lea.hbm %s2390_s3, 512 }
  0x19   :  { %p1823_p8 = scmp.ne.s32.totalorder %s2390_s3, %s1822_s21  ;;  %p1826_p9 = scmp.lt.u32.totalorder %s1822_s21, %s2390_s3 }
  0x1b   :  { %p1828_p10 = pnand %p1826_p9, %p1823_p8 }
  0x1d   :  { %1831 = shalt.err (!%p1828_p10)
}
  0x1e   :  { %s1832_s28 = scalar_lea.vmem %s2115_s24, 512  ;;  %p1837_p12 = scmp.lt.s32.totalorder %s2115_s24, %s2115_s24 }
  0x1f   :  { %p1833_p11 = scmp.ne.s32.totalorder %s2115_s24, %s1832_s28  ;;  %p1838_p13 = scmp.lt.s32.totalorder %s1832_s28, %s1832_s28 }
  0x21   :  { %p1839_p0 = por %p1838_p13, %p1837_p12 }
  0x23   :  { %p1840_p1 = pnand %p1839_p0, %p1833_p11 }
  0x25   :  { %1843 = shalt.err (!%p1840_p1)
}
  0x26   :  { %72 = dma.hbm_to_vmem [thread:$0]  %s2390_s3, 512, %s2115_s24, [#allocation9], %s2036_s15, %s2036_s15, %s2037_s16  }
  0x27   :  { %s2038_s29 = smov [#allocation11]   ;;  %s1844_s17 = scalar_lea.hbm %s2393_s6, 32 }
  0x28   :  { %s92_s30 = sshll.u32 %s2038_s29, 4  ;;  %p1845_p2 = scmp.ne.s32.totalorder %s2393_s6, %s1844_s17  ;;  %s93_s30 = int_to_ptr.vmem [resolvable:$true] %s92_s30 }
  0x29   :  { %p1848_p3 = scmp.lt.u32.totalorder %s1844_s17, %s2393_s6 }
  0x2b   :  { %p1850_p4 = pnand %p1848_p3, %p1845_p2 }
  0x2d   :  { %1853 = shalt.err (!%p1850_p4)
}
  0x2e   :  { %s1854_s23 = scalar_lea.vmem %s93_s30, 32  ;;  %p1859_p6 = scmp.lt.s32.totalorder %s93_s30, %s93_s30 }
  0x2f   :  { %p1855_p5 = scmp.ne.s32.totalorder %s93_s30, %s1854_s23  ;;  %p1860_p7 = scmp.lt.s32.totalorder %s1854_s23, %s1854_s23 }
  0x31   :  { %p1861_p8 = por %p1860_p7, %p1859_p6 }
  0x33   :  { %p1862_p9 = pnand %p1861_p8, %p1855_p5 }
  0x35   :  { %1865 = shalt.err (!%p1862_p9)
}
  0x36   :  { %s2039_s3 = smov 16   ;;  %s2040_s24 = smov 1  }
  0x37   :  { %98 = dma.hbm_to_vmem [thread:$0]  %s2393_s6, 32, %s93_s30, [#allocation12], %s2039_s3, %s2039_s3, %s2040_s24  }
  0x38   :  { %s2041_s27 = smov [#allocation2]   ;;  %s2042_s1 = smov [#allocation7]  }
  0x39   :  { %s30_s28 = sshll.u32 %s2041_s27, 4  ;;  %s54_s22 = sshll.u32 %s2042_s1, 4  ;;  %s31_s28 = int_to_ptr.vmem [resolvable:$true] %s30_s28  ;;  %s55_s22 = int_to_ptr.vmem [resolvable:$true] %s54_s22 }
  0x3a   :  { %s1866_s14 = scalar_lea.hbm %s2387_s0, 256 }
  0x3b   :  { %p1867_p10 = scmp.ne.s32.totalorder %s2387_s0, %s1866_s14  ;;  %p1870_p11 = scmp.lt.u32.totalorder %s1866_s14, %s2387_s0 }
  0x3d   :  { %p1872_p12 = pnand %p1870_p11, %p1867_p10 }
  0x3f   :  { %1875 = shalt.err (!%p1872_p12)
}
  0x40   :  { %s1876_s6 = scalar_lea.vmem %s31_s28, 256  ;;  %p1881_p0 = scmp.lt.s32.totalorder %s31_s28, %s31_s28 }
  0x41   :  { %p1877_p13 = scmp.ne.s32.totalorder %s31_s28, %s1876_s6  ;;  %p1882_p1 = scmp.lt.s32.totalorder %s1876_s6, %s1876_s6 }
  0x43   :  { %p1883_p2 = por %p1882_p1, %p1881_p0 }
  0x45   :  { %p1884_p3 = pnand %p1883_p2, %p1877_p13 }
  0x47   :  { %1887 = shalt.err (!%p1884_p3)
}
  0x48   :  { %36 = dma.hbm_to_vmem [thread:$0]  %s2387_s0, 256, %s31_s28, [#allocation3], %s2036_s15, %s2036_s15, %s2037_s16  }
  0x49   :  { %s1888_s26 = scalar_lea.hbm %s2389_s2, 256 }
  0x4a   :  { %p1889_p4 = scmp.ne.s32.totalorder %s2389_s2, %s1888_s26  ;;  %p1892_p5 = scmp.lt.u32.totalorder %s1888_s26, %s2389_s2 }
  0x4c   :  { %p1894_p6 = pnand %p1892_p5, %p1889_p4 }
  0x4e   :  { %1897 = shalt.err (!%p1894_p6)
}
  0x4f   :  { %s1898_s14 = scalar_lea.vmem %s55_s22, 256  ;;  %p1903_p8 = scmp.lt.s32.totalorder %s55_s22, %s55_s22 }
  0x50   :  { %p1899_p7 = scmp.ne.s32.totalorder %s55_s22, %s1898_s14  ;;  %p1904_p9 = scmp.lt.s32.totalorder %s1898_s14, %s1898_s14 }
  0x52   :  { %p1905_p10 = por %p1904_p9, %p1903_p8 }
  0x54   :  { %p1906_p11 = pnand %p1905_p10, %p1899_p7 }
  0x56   :  { %1909 = shalt.err (!%p1906_p11)
}
  0x57   :  { %60 = dma.hbm_to_vmem [thread:$0]  %s2389_s2, 256, %s55_s22, [#allocation6], %s2036_s15, %s2036_s15, %s2037_s16  }
  0x58   :  { %s2043_s17 = smov [#allocation10]   ;;  %s2044_s19 = smov [#allocation13]  }
  0x59   :  { %s80_s18 = sshll.u32 %s2043_s17, 4  ;;  %s104_s20 = sshll.u32 %s2044_s19, 4  ;;  %s81_s18 = int_to_ptr.vmem [resolvable:$true] %s80_s18  ;;  %s105_s20 = int_to_ptr.vmem [resolvable:$true] %s104_s20 }
  0x5a   :  { %s1910_s21 = scalar_lea.hbm %s2392_s5, 512 }
  0x5b   :  { %p1911_p12 = scmp.ne.s32.totalorder %s2392_s5, %s1910_s21  ;;  %p1914_p13 = scmp.lt.u32.totalorder %s1910_s21, %s2392_s5 }
  0x5d   :  { %p1916_p0 = pnand %p1914_p13, %p1911_p12 }
  0x5f   :  { %1919 = shalt.err (!%p1916_p0)
}
  0x60   :  { %s1920_s2 = scalar_lea.vmem %s81_s18, 512  ;;  %p1925_p2 = scmp.lt.s32.totalorder %s81_s18, %s81_s18 }
  0x61   :  { %p1921_p1 = scmp.ne.s32.totalorder %s81_s18, %s1920_s2  ;;  %p1926_p3 = scmp.lt.s32.totalorder %s1920_s2, %s1920_s2 }
  0x63   :  { %p1927_p4 = por %p1926_p3, %p1925_p2 }
  0x65   :  { %p1928_p5 = pnand %p1927_p4, %p1921_p1 }
  0x67   :  { %1931 = shalt.err (!%p1928_p5)
}
  0x68   :  { %86 = dma.hbm_to_vmem [thread:$0]  %s2392_s5, 512, %s81_s18, [#allocation9], %s2036_s15, %s2036_s15, %s2037_s16  }
  0x69   :  { %s1932_s14 = scalar_lea.hbm %s2394_s7, 512 }
  0x6a   :  { %p1933_p6 = scmp.ne.s32.totalorder %s2394_s7, %s1932_s14  ;;  %p1936_p7 = scmp.lt.u32.totalorder %s1932_s14, %s2394_s7 }
  0x6c   :  { %p1938_p8 = pnand %p1936_p7, %p1933_p6 }
  0x6e   :  { %1941 = shalt.err (!%p1938_p8)
}
  0x6f   :  { %s1942_s6 = scalar_lea.vmem %s105_s20, 512  ;;  %p1947_p10 = scmp.lt.s32.totalorder %s105_s20, %s105_s20 }
  0x70   :  { %p1943_p9 = scmp.ne.s32.totalorder %s105_s20, %s1942_s6  ;;  %p1948_p11 = scmp.lt.s32.totalorder %s1942_s6, %s1942_s6 }
  0x72   :  { %p1949_p12 = por %p1948_p11, %p1947_p10 }
  0x74   :  { %p1950_p13 = pnand %p1949_p12, %p1943_p9 }
  0x76   :  { %1953 = shalt.err (!%p1950_p13)
}
  0x77   :  { %110 = dma.hbm_to_vmem [thread:$0]  %s2394_s7, 512, %s105_s20, [#allocation12], %s2036_s15, %s2036_s15, %s2037_s16  }
  0x78   :  { %s2045_s30 = smov [#allocation14]   ;;  %s1954_s26 = scalar_lea.hbm %s2395_s8, 32 }
  0x79   :  { %s116_s21 = sshll.u32 %s2045_s30, 4  ;;  %p1955_p0 = scmp.ne.s32.totalorder %s2395_s8, %s1954_s26  ;;  %s117_s21 = int_to_ptr.vmem [resolvable:$true] %s116_s21 }
  0x7a   :  { %p1958_p1 = scmp.lt.u32.totalorder %s1954_s26, %s2395_s8 }
  0x7c   :  { %p1960_p2 = pnand %p1958_p1, %p1955_p0 }
  0x7e   :  { %1963 = shalt.err (!%p1960_p2)
}
  0x7f   :  { %s1964_s29 = scalar_lea.vmem %s117_s21, 32  ;;  %p1969_p4 = scmp.lt.s32.totalorder %s117_s21, %s117_s21 }
  0x80   :  { %p1965_p3 = scmp.ne.s32.totalorder %s117_s21, %s1964_s29  ;;  %p1970_p5 = scmp.lt.s32.totalorder %s1964_s29, %s1964_s29 }
  0x82   :  { %p1971_p6 = por %p1970_p5, %p1969_p4 }
  0x84   :  { %p1972_p7 = pnand %p1971_p6, %p1965_p3 }
  0x86   :  { %1975 = shalt.err (!%p1972_p7)
}
  0x87   :  { %122 = dma.hbm_to_vmem [thread:$0]  %s2395_s8, 32, %s117_s21, [#allocation15], %s2039_s3, %s2039_s3, %s2040_s24  }
  0x88   :  { %2020 = dma.done.wait [#allocation3], 256  }
  0x89   :  { %2021 = vsyncadd [#allocation3], 4294967040 }
  0x8a   :  { %2022 = dma.done.wait [#allocation6], 512  }
  0x8b   :  { %2023 = vsyncadd [#allocation6], 4294966784 }
  0x8c   :  { %2024 = dma.done.wait [#allocation9], 1024  }
  0x8d   :  { %2025 = vsyncadd [#allocation9], 4294966272 }
  0x8e   :  { %2026 = dma.done.wait [#allocation12], 544  }
  0x8f   :  { %2027 = vsyncadd [#allocation12], 4294966752 }
  0x90   :  { %2028 = dma.done.wait [#allocation15], 32  }
  0x91   :  { %2029 = vsyncadd [#allocation15], 4294967264  ;;  %vm166_vm0 = vcmask 130048   ;;  %v157_v0 = vld [vmem:[#allocation8] sm:$0xff]  ;;  %v158_v1 = vld [vmem:[#allocation8 + $0x8] sm:$0xff]  ;;  %v2046_v15 = vmov 0.0  }
  0x92   :  { %v2242_v2 = vld [vmem:[#allocation2] sm:$0xff]  ;;  %v1734_v3 = vpack.c.bf16 %v158_v1, %v157_v0  ;;  %v248_v4 = vld [vmem:[#allocation10] sm:$0xff]  ;;  %v249_v5 = vld [vmem:[#allocation10 + $0x8] sm:$0xff]  ;;  %vm2047_vm1 = vmmov 0   ;;  %vm582_vm2 = vcmask 64512   ;;  %s2048_s18 = smov [#allocation17]  }
  0x93   :  { %1642 = vmatprep.mubr.msk.f32.mxu1 %vm166_vm0, %v2242_v2  ;;  %v1738_v6 = vpack.c.bf16 %v249_v5, %v248_v4  ;;  %v338_v7 = vld [vmem:[#allocation13] sm:$0xff]  ;;  %v339_v8 = vld [vmem:[#allocation13 + $0x8] sm:$0xff]  ;;  %v2246_v9 = vld [vmem:[#allocation2 + $0x8] sm:$0xff]  ;;  %s1532_s30 = sshll.u32 %s2048_s18, 4  ;;  %s1533_s30 = int_to_ptr.vmem [resolvable:$true] %s1532_s30 }
  0x94   :  { %1735 = vmatprep.subr.bf16.mxu1 %v1734_v3  ;;  %v1742_v10 = vpack.c.bf16 %v339_v8, %v338_v7  ;;  %v2248_v11 = vld [vmem:[#allocation5] sm:$0xff]  ;;  %v2254_v12 = vld [vmem:[#allocation5 + $0x8] sm:$0xff]  ;;  %v2258_v13 = vld [vmem:[#allocation7] sm:$0xff]  ;;  %p1981_p9 = scmp.lt.s32.totalorder %s1533_s30, %s1533_s30 }
  0x95   :  { %1737 = vmatpush3.bf16.msra.mxu1 %v1734_v3  ;;  %1656 = vmatprep.mubr.msk.f32.mxu0 %vm166_vm0, %v2258_v13  ;;  %v2262_v14 = vld [vmem:[#allocation7 + $0x8] sm:$0xff]  ;;  %v1555_v18 = vld [vmem:[#allocation11] ss:$0 sm:$0xff]  ;;  %v1552_v20 = vld [vmem:[%s2391_s4] ss:$0 sm:$0xff] }
  0x96   :  { %1739 = vmatprep.subr.bf16.mxu1 %v1738_v6  ;;  %1743 = vmatprep.subr.bf16.mxu0 %v1742_v10  ;;  %v1558_v26 = vld [vmem:[#allocation14] ss:$0 sm:$0xff]  ;;  %v842_v49 = vld [vmem:[#allocation10 + $0x10] sm:$0xff]  ;;  %v843_v50 = vld [vmem:[#allocation10 + $0x18] sm:$0xff] }
  0x97   :  { %1745 = vmatpush3.bf16.msra.mxu0 %v1742_v10  ;;  %v1750_v51 = vpack.c.bf16 %v843_v50, %v842_v49  ;;  %v756_v52 = vld [vmem:[#allocation8 + $0x10] sm:$0xff]  ;;  %v757_v53 = vld [vmem:[#allocation8 + $0x18] sm:$0xff] }
  0x98   :  { %1643 = vmatmul.mubr.msk.f32.vlgmr.msra.gmra.mrb[0].mxu1 %vm166_vm0, %v2246_v9  ;;  %1664 = vmatprep.subr.mxu0 %v2046_v15  ;;  %v1746_v54 = vpack.c.bf16 %v757_v53, %v756_v52  ;;  %v928_v59 = vld [vmem:[#allocation13 + $0x10] sm:$0xff]  ;;  %v929_v60 = vld [vmem:[#allocation13 + $0x18] sm:$0xff] }
  0x99   :  { %1741 = vmatpush3.bf16.msra.mxu1 %v1738_v6  ;;  %1649 = vmatprep.mubr.msk.f32.mxu1 %vm166_vm0, %v2248_v11  ;;  %v1754_v63 = vpack.c.bf16 %v929_v60, %v928_v59 }
  0x9a   :  { %1657 = vmatmul.mubr.msk.f32.vlgmr.msra.gmra.mrb[0].mxu0 %vm166_vm0, %v2262_v14  ;;  %1659 = vmatprep.subr.mxu1 %v2046_v15 }
  0x9b   :  { %1666 = vmatprep.mubr.msk.f32.mxu0 %vm2047_vm1, %v2046_v15 }
  0x9c   :  { %1650 = vmatmul.mubr.msk.f32.vlgmr.msra.gmra.mrb[2].mxu1 %vm166_vm0, %v2254_v12 }
  0x9d   :  { %1661 = vmatprep.mubr.msk.f32.mxu1 %vm2047_vm1, %v2046_v15 }
 0x16b   :  { %v1644_v16 = vpop.f32.mrb[0].mxu1 }
 0x16c   :  { %v239_v17 = vpop.f32.mrb[1].mxu1  ;;  %v245_v24 = vadd.f32 %v1644_v16, %v1552_v20 }
 0x16d   :  { %v240_v25 = vadd.f32 %v1552_v20, %v239_v17  ;;  %v1658_v27 = vpop.f32.mrb[0].mxu0 }
 0x16e   :  { %v425_v28 = vadd.f32 %v1658_v27, %v1558_v26  ;;  %v419_v29 = vpop.f32.mrb[1].mxu0 }
 0x16f   :  { %v1651_v19 = vpop.f32.mrb[2].mxu1  ;;  %v420_v30 = vadd.f32 %v1558_v26, %v419_v29 }
 0x170   :  { %v335_v21 = vadd.f32 %v1651_v19, %v1555_v18  ;;  %v329_v22 = vpop.f32.mrb[3].mxu1 }
 0x171   :  { %v330_v23 = vadd.f32 %v1555_v18, %v329_v22 }
 0x172   :  { %1665 = vmatpush3.xpose.msk.msra.mxu0 %vm166_vm0, %v335_v21 }
 0x173   :  { %1660 = vmatpush3.xpose.msk.msra.mxu1 %vm166_vm0, %v330_v23  ;;  %1674 = vmatprep.subr.mxu0 %v2046_v15 }
 0x174   :  { %1669 = vmatprep.subr.mxu1 %v2046_v15 }
 0x175   :  { %1667 = vmatmul.mubr.msk.f32.vlgmr.msra.gmra.mrb[2].mxu0 %vm166_vm0, %v245_v24 }
 0x176   :  { %1662 = vmatmul.mubr.msk.f32.vlgmr.msra.gmra.mrb[4].mxu1 %vm166_vm0, %v240_v25  ;;  %1676 = vmatprep.mubr.msk.f32.mxu0 %vm2047_vm1, %v2046_v15 }
 0x177   :  { %1671 = vmatprep.mubr.msk.f32.mxu1 %vm2047_vm1, %v2046_v15  ;;  %1675 = vmatpush3.msra.mxu0 %v425_v28 }
 0x178   :  { %1670 = vmatpush3.msra.mxu1 %v420_v30  ;;  %1751 = vmatprep.subr.bf16.mxu0 %v1750_v51 }
 0x179   :  { %1747 = vmatprep.subr.bf16.mxu1 %v1746_v54 }
 0x248   :  { %v576_v31 = vpop.f32.mrb[2].mxu0 }
 0x249   :  { %v581_v32 = vmul.f32 0.25, %v576_v31  ;;  %v500_v33 = vpop.f32.mrb[4].mxu1  ;;  %v1668_v34 = vpop.f32.mrb[3].mxu0 }
 0x24a   :  { %v1663_v35 = vpop.f32.mrb[5].mxu1  ;;  %v580_v36 = vmul.f32 0.25, %v500_v33 }
 0x24b   :  { %v586_v37 = vsel %vm582_vm2, %v581_v32, -inf }
 0x24c   :  { %587 = vmax.xlane.f32.xlu0 %v586_v37  ;;  %v583_v38 = vsel %vm582_vm2, %v580_v36, -inf  ;;  %v1583_v37 = vld [vmem:[%s2396_s9 + $0x10] sm:$0xff] }
 0x250   :  { %584 = vmax.xlane.f32.xlu0 %v583_v38  ;;  %v1584_v38 = vld [vmem:[%s2396_s9 + $0x18] sm:$0xff] }
 0x2d9   :  { %v588_v39 = vpop.xlane.xlu0 %587 }
 0x2da   :  { %v590_v40 = vsub.f32 %v581_v32, %v588_v39  ;;  %v1758_v39 = vpack.c.bf16 %v1584_v38, %v1583_v37 }
 0x2dc   :  { %v593_v41 = vmul.f32 1.442695, %v590_v40 }
 0x2dd   :  { %v585_v42 = vpop.xlane.xlu0 %584 }
 0x2de   :  { %1784 = vpow2.f32 %v593_v41  ;;  %v589_v43 = vsub.f32 %v580_v36, %v585_v42 }
 0x2e0   :  { %v591_v44 = vmul.f32 1.442695, %v589_v43 }
 0x2e2   :  { %1786 = vpow2.f32 %v591_v44 }
 0x2e8   :  { %v1785_v45 = vpop.eup %1784 }
 0x2e9   :  { %v598_v46 = vsel %vm582_vm2, %v1785_v45, 0.0 }
 0x2ea   :  { %599 = vadd.xlane.f32.xlu1 %v598_v46  ;;  %v753_v46 = vld [vmem:[%s2396_s9] sm:$0xff] }
 0x2ec   :  { %v1787_v47 = vpop.eup %1786 }
 0x2ed   :  { %v595_v48 = vsel %vm582_vm2, %v1787_v47, 0.0 }
 0x2ee   :  { %596 = vadd.xlane.f32.xlu1 %v595_v48 }
 0x377   :  { %v600_v55 = vpop.xlane.xlu1 %599 }
 0x378   :  { %1788 = vrcp.f32 %v600_v55 }
 0x37b   :  { %v597_v56 = vpop.xlane.xlu1 %596 }
 0x37c   :  { %1790 = vrcp.f32 %v597_v56 }
 0x382   :  { %v1789_v57 = vpop.eup %1788 }
 0x383   :  { %v604_v58 = vmul.f32 %v1789_v57, %v1785_v45 }
 0x385   :  { %606 = vst.msk [vmem:[#allocation17 + $0x10] sm:$0xff] %vm582_vm2, %v604_v58  ;;  %1677 = vmatmul.mubr.msk.f32.vlgmr.msra.gmra.mrb[4].mxu0 %vm582_vm2, %v604_v58 }
 0x386   :  { %v1791_v61 = vpop.eup %1790  ;;  %1753 = vmatpush3.bf16.msra.mxu0 %v1750_v51  ;;  %1690 = vmatprep.mubr.msk.f32.mxu0 %vm166_vm0, %v2248_v11 }
 0x387   :  { %v603_v62 = vmul.f32 %v1791_v61, %v1787_v47  ;;  %1700 = vmatprep.subr.mxu0 %v2046_v15  ;;  %v754_v47 = vld [vmem:[%s2396_s9 + $0x8] sm:$0xff]  ;;  %s1976_s9 = scalar_lea.vmem %s1533_s30, 512 }
 0x388   :  { %v1762_v48 = vpack.c.bf16 %v754_v47, %v753_v46  ;;  %p1977_p8 = scmp.ne.s32.totalorder %s1533_s30, %s1976_s9  ;;  %p1982_p10 = scmp.lt.s32.totalorder %s1976_s9, %s1976_s9 }
 0x389   :  { %605 = vst.msk [vmem:[#allocation17] sm:$0xff] %vm582_vm2, %v603_v62  ;;  %1672 = vmatmul.mubr.msk.f32.vlgmr.msra.gmra.mrb[6].mxu1 %vm582_vm2, %v603_v62  ;;  %1691 = vmatmul.mubr.msk.f32.vlgmr.msra.gmra.mrb[6].mxu0 %vm166_vm0, %v2254_v12 }
 0x38a   :  { %1749 = vmatpush3.bf16.msra.mxu1 %v1746_v54  ;;  %1683 = vmatprep.mubr.msk.f32.mxu1 %vm166_vm0, %v2242_v2  ;;  %v1571_v2 = vld [vmem:[#allocation11 + $0x1] ss:$0 sm:$0xff]  ;;  %p1983_p11 = por %p1982_p10, %p1981_p9 }
 0x38b   :  { %1755 = vmatprep.subr.bf16.mxu1 %v1754_v63  ;;  %1702 = vmatprep.mubr.msk.f32.mxu0 %vm2047_vm1, %v2046_v15 }
 0x38c   :  { %p1984_p12 = pnand %p1983_p11, %p1977_p8 }
 0x38d   :  { %1684 = vmatmul.mubr.msk.f32.vlgmr.msra.gmra.mrb[8].mxu1 %vm166_vm0, %v2246_v9  ;;  %v1568_v9 = vld [vmem:[%s2391_s4 + $0x1] ss:$0 sm:$0xff] }
 0x38e   :  { %1757 = vmatpush3.bf16.msra.mxu1 %v1754_v63  ;;  %1697 = vmatprep.mubr.msk.f32.mxu1 %vm166_vm0, %v2258_v13 }
 0x38f   :  { %1705 = vmatprep.subr.mxu1 %v2046_v15 }
 0x391   :  { %1698 = vmatmul.mubr.msk.f32.vlgmr.msra.gmra.mrb[10].mxu1 %vm166_vm0, %v2262_v14  ;;  %v1574_v14 = vld [vmem:[#allocation14 + $0x1] ss:$0 sm:$0xff] }
 0x392   :  { %1707 = vmatprep.mubr.msk.f32.mxu1 %vm2047_vm1, %v2046_v15 }
 0x458   :  { %v2311_v0 = vpop.f32.mrb[4].mxu0 }
 0x459   :  { %v1678_v1 = vpop.f32.mrb[5].mxu0 }
 0x45c   :  { %v2313_v3 = vpop.f32.mrb[6].mxu1  ;;  %v1692_v4 = vpop.f32.mrb[6].mxu0 }
 0x45d   :  { %v924_v5 = vadd.f32 %v1692_v4, %v1571_v2  ;;  %v1673_v6 = vpop.f32.mrb[7].mxu1  ;;  %v918_v7 = vpop.f32.mrb[7].mxu0 }
 0x45e   :  { %v919_v8 = vadd.f32 %v1571_v2, %v918_v7 }
 0x45f   :  { %1706 = vmatpush3.xpose.msk.msra.mxu1 %vm166_vm0, %v924_v5 }
 0x460   :  { %v1685_v10 = vpop.f32.mrb[8].mxu1  ;;  %1701 = vmatpush3.xpose.msk.msra.mxu0 %vm166_vm0, %v919_v8  ;;  %1715 = vmatprep.subr.mxu1 %v2046_v15 }
 0x461   :  { %v838_v11 = vadd.f32 %v1685_v10, %v1568_v9  ;;  %v832_v12 = vpop.f32.mrb[9].mxu1  ;;  %1710 = vmatprep.subr.mxu0 %v2046_v15 }
 0x462   :  { %v833_v13 = vadd.f32 %v1568_v9, %v832_v12 }
 0x463   :  { %1708 = vmatmul.mubr.msk.f32.vlgmr.msra.gmra.mrb[12].mxu1 %vm166_vm0, %v838_v11 }
 0x464   :  { %1703 = vmatmul.mubr.msk.f32.vlgmr.msra.gmra.mrb[8].mxu0 %vm166_vm0, %v833_v13  ;;  %v1699_v16 = vpop.f32.mrb[10].mxu1  ;;  %1717 = vmatprep.mubr.msk.f32.mxu1 %vm2047_vm1, %v2046_v15 }
 0x465   :  { %v1010_v17 = vadd.f32 %v1699_v16, %v1574_v14  ;;  %v1004_v18 = vpop.f32.mrb[11].mxu1  ;;  %1712 = vmatprep.mubr.msk.f32.mxu0 %vm2047_vm1, %v2046_v15 }
 0x466   :  { %v1005_v19 = vadd.f32 %v1574_v14, %v1004_v18 }
 0x467   :  { %1716 = vmatpush3.msra.mxu1 %v1010_v17 }
 0x468   :  { %1711 = vmatpush3.msra.mxu0 %v1005_v19 }
 0x469   :  { %1759 = vmatprep.subr.bf16.mxu0 %v1758_v39 }
 0x536   :  { %v1161_v20 = vpop.f32.mrb[12].mxu1 }
 0x537   :  { %v1166_v21 = vmul.f32 0.25, %v1161_v20  ;;  %v1085_v22 = vpop.f32.mrb[8].mxu0  ;;  %v1709_v23 = vpop.f32.mrb[13].mxu1 }
 0x538   :  { %v1165_v24 = vmul.f32 0.25, %v1085_v22  ;;  %v1704_v25 = vpop.f32.mrb[9].mxu0 }
 0x539   :  { %v1170_v26 = vsel %vm582_vm2, %v1166_v21, -inf }
 0x53a   :  { %1171 = vmax.xlane.f32.xlu1 %v1170_v26  ;;  %v1167_v27 = vsel %vm582_vm2, %v1165_v24, -inf }
 0x53b   :  { %1168 = vmax.xlane.f32.xlu0 %v1167_v27 }
 0x5c7   :  { %v1172_v28 = vpop.xlane.xlu1 %1171 }
 0x5c8   :  { %v1174_v29 = vsub.f32 %v1166_v21, %v1172_v28  ;;  %v1169_v30 = vpop.xlane.xlu0 %1168 }
 0x5c9   :  { %v1173_v31 = vsub.f32 %v1165_v24, %v1169_v30 }
 0x5ca   :  { %v1177_v15 = vmul.f32 1.442695, %v1174_v29 }
 0x5cb   :  { %v1175_v32 = vmul.f32 1.442695, %v1173_v31 }
 0x5cc   :  { %1792 = vpow2.f32 %v1177_v15 }
 0x5cd   :  { %1794 = vpow2.f32 %v1175_v32 }
 0x5d6   :  { %v1793_v33 = vpop.eup %1792 }
 0x5d7   :  { %v1795_v34 = vpop.eup %1794  ;;  %v1182_v35 = vsel %vm582_vm2, %v1793_v33, 0.0 }
 0x5d8   :  { %1183 = vadd.xlane.f32.xlu1 %v1182_v35  ;;  %v1179_v36 = vsel %vm582_vm2, %v1795_v34, 0.0 }
 0x5d9   :  { %1180 = vadd.xlane.f32.xlu0 %v1179_v36 }
 0x665   :  { %v1184_v40 = vpop.xlane.xlu1 %1183 }
 0x666   :  { %1796 = vrcp.f32 %v1184_v40  ;;  %v1181_v41 = vpop.xlane.xlu0 %1180 }
 0x667   :  { %1798 = vrcp.f32 %v1181_v41 }
 0x670   :  { %v1797_v42 = vpop.eup %1796 }
 0x671   :  { %v1799_v43 = vpop.eup %1798  ;;  %v1188_v44 = vmul.f32 %v1797_v42, %v1793_v33 }
 0x672   :  { %v1187_v45 = vmul.f32 %v1799_v43, %v1795_v34 }
 0x673   :  { %1191 = vst.msk [vmem:[#allocation17 + $0x18] sm:$0xff] %vm582_vm2, %v1188_v44  ;;  %1718 = vmatmul.mubr.msk.f32.vlgmr.msra.gmra.mrb[14].mxu1 %vm582_vm2, %v1188_v44 }
 0x674   :  { %1190 = vst.msk [vmem:[#allocation17 + $0x8] sm:$0xff] %vm582_vm2, %v1187_v45  ;;  %1713 = vmatmul.mubr.msk.f32.vlgmr.msra.gmra.mrb[10].mxu0 %vm582_vm2, %v1187_v45 }
 0x675   :  { %1761 = vmatpush3.bf16.msra.mxu0 %v1758_v39 }
 0x676   :  { %1763 = vmatprep.subr.bf16.mxu0 %v1762_v48 }
 0x746   :  { %v1334_v49 = vpop.f32.mrb[14].mxu1 }
 0x747   :  { %v1261_v50 = vpop.f32.mrb[10].mxu0  ;;  %v1719_v51 = vpop.f32.mrb[15].mxu1 }
 0x748   :  { %v1714_v52 = vpop.f32.mrb[11].mxu0  ;;  %1724 = vmatprep.mubr.msk.f32.mxu0 %vm166_vm0, %v1261_v50 }
 0x749   :  { %1725 = vmatmul.mubr.msk.f32.vlgmr.msra.gmra.mrb[12].mxu0 %vm166_vm0, %v1334_v49 }
 0x74a   :  { %1765 = vmatpush3.bf16.msra.mxu0 %v1762_v48  ;;  %1731 = vmatprep.mubr.msk.f32.mxu0 %vm166_vm0, %v2313_v3 }
 0x751   :  { %1732 = vmatmul.mubr.msk.f32.vlgmr.msra.gmra.mrb[12].mxu0 %vm166_vm0, %v2311_v0 }
 0x752   :  { %1987 = shalt.err (!%p1984_p12)
}
 0x753   :  { %s1988_s25 = scalar_lea.hbm %s2399_s12, 512 }
 0x754   :  { %p1989_p13 = scmp.ne.s32.totalorder %s2399_s12, %s1988_s25  ;;  %p1992_p0 = scmp.lt.u32.totalorder %s1988_s25, %s2399_s12 }
 0x756   :  { %p1994_p1 = pnand %p1992_p0, %p1989_p13 }
 0x758   :  { %1997 = shalt.err (!%p1994_p1)
}
 0x759   :  { %1538 = dma.vmem_to_hbm [thread:$0]  %s1533_s30, 512, %s2399_s12, [#allocation18], %s2036_s15, %s2036_s15, %s2037_s16   ;;  %vm1512_vm3 = vcmask 261120  }
 0x75a   :  { %v1589_v53 = vld [vmem:[%s2397_s10] ss:$0 sm:$0xff]  ;;  %s2049_s8 = smov [#allocation16]  }
 0x75b   :  { %s1520_s3 = sshll.u32 %s2049_s8, 4  ;;  %s1521_s3 = int_to_ptr.vmem [resolvable:$true] %s1520_s3 }
 0x75c   :  { %s1998_s24 = scalar_lea.vmem %s1521_s3, 256  ;;  %p2003_p3 = scmp.lt.s32.totalorder %s1521_s3, %s1521_s3 }
 0x75d   :  { %p1999_p2 = scmp.ne.s32.totalorder %s1521_s3, %s1998_s24  ;;  %p2004_p4 = scmp.lt.s32.totalorder %s1998_s24, %s1998_s24 }
 0x75f   :  { %p2005_p5 = por %p2004_p4, %p2003_p3 }
 0x761   :  { %p2006_p6 = pnand %p2005_p5, %p1999_p2 }
 0x824   :  { %v1733_v54 = vpop.f32.mrb[12].mxu0 }
 0x825   :  { %v1511_v55 = vadd.f32 %v1733_v54, %v1589_v53  ;;  %v1494_v56 = vpop.f32.mrb[13].mxu0 }
 0x826   :  { %v1510_v57 = vadd.f32 %v1589_v53, %v1494_v56 }
 0x827   :  { %1514 = vst.msk [vmem:[#allocation16 + $0x8] sm:$0xff] %vm1512_vm3, %v1511_v55 }
 0x828   :  { %1513 = vst.msk [vmem:[#allocation16] sm:$0xff] %vm1512_vm3, %v1510_v57 }
 0x829   :  { %2009 = shalt.err (!%p2006_p6)
}
 0x82a   :  { %s2010_s10 = scalar_lea.hbm %s2398_s11, 256 }
 0x82b   :  { %p2011_p7 = scmp.ne.s32.totalorder %s2398_s11, %s2010_s10  ;;  %p2014_p8 = scmp.lt.u32.totalorder %s2010_s10, %s2398_s11 }
 0x82d   :  { %p2016_p9 = pnand %p2014_p8, %p2011_p7 }
 0x82f   :  { %2019 = shalt.err (!%p2016_p9)
}
 0x830   :  { %1526 = dma.vmem_to_hbm [thread:$0]  %s1521_s3, 256, %s2398_s11, [#allocation4], %s2036_s15, %s2036_s15, %s2037_s16  }
 0x831   :  { %2030 = dma.done.wait [#allocation4], 256  }
 0x832   :  { %2031 = vsyncadd [#allocation4], 4294967040 }
 0x833   :  { %2032 = dma.done.wait [#allocation18], 512  }
 0x834   :  { %2033 = vsyncadd [#allocation18], 4294966784 }
 0x835   :  { %1545 = vsyncpa [#allocation3], 1 }
 0x836   :  { %1546 = vsyncpa [#allocation6], 1 }
 0x837   :  { %1547 = vsyncpa [#allocation9], 1 }
 0x838   :  { %1548 = vsyncpa [#allocation12], 1 }
 0x839   :  { %1549 = vsyncpa [#allocation15], 1 }
 0x83a   :  { %1550 = vsyncpa [#allocation4], 1 }
 0x83b   :  { %1551 = vsyncpa [#allocation18], 1 }

</bundles_post_ra>
